<compile_context>
chip_gen: v7x
topology: tpu7x:2x2x1
jax: 0.10.0
libtpu: 0.0.40
codegen_flags: <defaults>
</compile_context>

<pallas_src>
from functools import partial

import numpy as np
import jax
import jax.numpy as jnp
from jax import lax
from jax.experimental import pallas as pl
from jax.experimental.pallas import tpu as pltpu

EPS = 1e-5
IMGS_PER_BLOCK = 2          # 2 images * C=4 channels = 8 f32 sublanes -> full vregs


def resblock_kernel(x_ref, w1_ref, w2_ref, out_ref, *, H, W, C, B):
    """One grid step = B images packed on sublanes; x_ref block is (1, B*C, H*W)."""
    P = B * C
    HW = H * W

    x = x_ref[0].astype(jnp.float32)                       # (P, HW)

    # ---- within-image spatial coordinates + 4 elementary border predicates.
    # Computed ONCE per invocation, reused for both convs and all packed images
    # (every sublane row is a complete flattened H*W plane).
    pos = lax.broadcasted_iota(jnp.int32, (P, HW), 1)
    if W & (W - 1) == 0:                                   # power-of-two width
        row = pos >> (W.bit_length() - 1)
        col = pos & (W - 1)
    else:
        row = pos // W
        col = pos - row * W
    not_top = row >= 1          # tap valid when dh = -1
    not_bot = row < H - 1       # tap valid when dh = +1
    not_lft = col >= 1          # tap valid when dw = -1
    not_rgt = col < W - 1       # tap valid when dw = +1

    def conv3x3(src, w_ref):
        # src: (P, HW).  w_ref: block-diagonal im2col weight (P, 9*P) built in
        # the wrapper, so one MXU matmul contracts all 9 taps x C_in channels
        # for every image packed in the block.  Bias omitted on purpose: a
        # per-channel bias cancels under the InstanceNorm mean subtraction.
        planes = []
        for dh in (-1, 0, 1):
            for dw in (-1, 0, 1):
                s = dh * W + dw                            # spatial offset on lanes
                t = src if s == 0 else pltpu.roll(src, shift=(-s) % HW, axis=1)
                m = None
                if dh == -1:
                    m = not_top
                elif dh == 1:
                    m = not_bot
                if dw == -1:
                    m = not_lft if m is None else (m & not_lft)
                elif dw == 1:
                    m = not_rgt if m is None else (m & not_rgt)
                if m is not None:
                    t = jnp.where(m, t, 0.0)               # zero-padding semantics
                planes.append(t)
        a = jnp.concatenate(planes, axis=0)                # (9*P, HW) im2col
        # Tiny matmul (P x 9P x HW); MXU otherwise idle, HIGHEST keeps f32 accuracy.
        return jnp.dot(w_ref[...], a,
                       preferred_element_type=jnp.float32,
                       precision=lax.Precision.HIGHEST)

    inv_hw = 1.0 / HW

    def inorm(y):
        # Fused single-pass statistics; biased variance (PyTorch training-mode IN).
        mean = jnp.sum(y, axis=1, keepdims=True) * inv_hw
        ex2 = jnp.sum(y * y, axis=1, keepdims=True) * inv_hw
        var = ex2 - mean * mean
        return (y - mean) * lax.rsqrt(var + EPS)

    y1 = jnp.maximum(inorm(conv3x3(x, w1_ref)), 0.0)       # Conv2dBlock #1: IN + ReLU
    y2 = inorm(conv3x3(y1, w2_ref))                        # Conv2dBlock #2: IN only
    out_ref[0] = (y2 + x).astype(out_ref.dtype)            # residual add


def _pack_weight(w_oihw, B):
    # torch (O, I, kh, kw) -> block-diagonal im2col weight (B*C, 9*B*C):
    #   Wbd[b*C+co, k*(B*C) + b'*C + ci] = w[co, ci, kh, kw] * (b == b'),  k = kh*3+kw
    C = w_oihw.shape[0]
    w_k = jnp.transpose(w_oihw, (2, 3, 0, 1)).reshape(9, C, C).astype(jnp.float32)
    eye = jnp.eye(B, dtype=jnp.float32)
    w_bd = jnp.einsum('koc,bd->bokdc', w_k, eye)           # (B, C, 9, B, C)
    return w_bd.reshape(B * C, 9 * B * C)


@jax.jit
def resblock_nchw(x_nchw, w1_oihw, b1, w2_oihw, b2):
    # PyTorch-facing wrapper (NCHW in / NCHW out).  b1/b2 are accepted for
    # interface fidelity but unused: a per-channel conv bias cancels exactly
    # under the InstanceNorm mean subtraction that immediately follows.
    del b1, b2
    N, C, H, W = x_nchw.shape
    HW = H * W                                             # 256: lane-dense output
    # NOTE: for H*W not a multiple of 128, pad the flattened spatial axis in the
    # wrapper (and mask the pad lanes) to keep stores lane-dense.
    B = IMGS_PER_BLOCK
    pad = (-N) % B
    x_p = jnp.pad(x_nchw, ((0, pad), (0, 0), (0, 0), (0, 0))) if pad else x_nchw
    NB = (N + pad) // B
    P = B * C
    x_flat = x_p.reshape(NB, P, HW)                        # 2 images packed on sublanes

    w1p = _pack_weight(w1_oihw, B)
    w2p = _pack_weight(w2_oihw, B)

    out_flat = pl.pallas_call(
        partial(resblock_kernel, H=H, W=W, C=C, B=B),
        out_shape=jax.ShapeDtypeStruct((NB, P, HW), x_nchw.dtype),
        grid_spec=pltpu.PrefetchScalarGridSpec(
            num_scalar_prefetch=0,
            grid=(NB,),
            in_specs=[
                pl.BlockSpec((1, P, HW), lambda n: (n, 0, 0)),
                pl.BlockSpec((P, 9 * P), lambda n: (0, 0)),
                pl.BlockSpec((P, 9 * P), lambda n: (0, 0)),
            ],
            out_specs=pl.BlockSpec((1, P, HW), lambda n: (n, 0, 0)),
        ),
        compiler_params=pltpu.CompilerParams(
            dimension_semantics=("parallel",)),
    )(x_flat, w1p, w2p)

    out = out_flat.reshape(NB * B, C, H, W)
    return out[:N] if pad else out


def _reference_nchw(x, w1, b1, w2, b2):
    # Pure-JAX reference for validation (includes the biases the kernel folds out).
    def conv(x, w, b):
        y = lax.conv_general_dilated(
            x, w, (1, 1), ((1, 1), (1, 1)),
            dimension_numbers=('NCHW', 'OIHW', 'NCHW'),
            precision=lax.Precision.HIGHEST)
        return y + b.reshape(1, -1, 1, 1)

    def inorm(y):
        m = jnp.mean(y, axis=(2, 3), keepdims=True)
        v = jnp.mean((y - m) ** 2, axis=(2, 3), keepdims=True)
        return (y - m) * lax.rsqrt(v + EPS)

    y = jnp.maximum(inorm(conv(x, w1, b1)), 0.0)
    y = inorm(conv(y, w2, b2))
    return y + x


if __name__ == "__main__":
    N, C, H, W = 2, 4, 16, 16          # dim = 4
    key = jax.random.PRNGKey(0)
    k1, k2, k3, k4, k5 = jax.random.split(key, 5)

    x = jax.random.normal(k1, (N, C, H, W), jnp.float32)

    # Deterministic synthetic Conv2d params (PyTorch default-init-like bounds).
    fan_in = C * 3 * 3
    bound = 1.0 / (fan_in ** 0.5)
    w1 = jax.random.uniform(k2, (C, C, 3, 3), jnp.float32, -bound, bound)
    b1 = jax.random.uniform(k3, (C,), jnp.float32, -bound, bound)
    w2 = jax.random.uniform(k4, (C, C, 3, 3), jnp.float32, -bound, bound)
    b2 = jax.random.uniform(k5, (C,), jnp.float32, -bound, bound)

    out = jax.block_until_ready(resblock_nchw(x, w1, b1, w2, b2))

    ref = _reference_nchw(x, w1, b1, w2, b2)
    assert out.shape == (N, C, H, W)
    # 2e-3: allows for MXU pass-splitting rounding in the in-kernel f32 matmuls.
    np.testing.assert_allclose(np.asarray(out), np.asarray(ref),
                               atol=2e-3, rtol=2e-3)
    print("KERNEL_OK")
</pallas_src>

<mosaic_0001>
module attributes {stable_mosaic.version = 11 : i64} {
  func.func @resblock_kernel(%arg0: i32, %arg1: memref<1x8x256xf32, #tpu.memory_space<vmem>>, %arg2: memref<8x72xf32, #tpu.memory_space<vmem>>, %arg3: memref<8x72xf32, #tpu.memory_space<vmem>>, %arg4: memref<1x8x256xf32, #tpu.memory_space<vmem>>) attributes {dimension_semantics = [#tpu.dimension_semantics<parallel>], iteration_bounds = array<i64: 1>, scalar_prefetch = 0 : i64, scratch_operands = 0 : i64, tpu.core_type = #tpu.core_type<tc>, window_params = [{transform_indices = @transform_0, window_bounds = array<i64: 1, 8, 256>}, {pipeline_mode = #tpu.pipeline_mode<synchronous>, transform_indices = @transform_1, window_bounds = array<i64: 8, 72>}, {pipeline_mode = #tpu.pipeline_mode<synchronous>, transform_indices = @transform_2, window_bounds = array<i64: 8, 72>}, {transform_indices = @transform_3, window_bounds = array<i64: 1, 8, 256>}]} {
    %c0 = arith.constant 0 : index
    %c0_0 = arith.constant 0 : index
    %c0_1 = arith.constant 0 : index
    %0 = vector.load %arg1[%c0, %c0_0, %c0_1] : memref<1x8x256xf32, #tpu.memory_space<vmem>>, vector<1x8x256xf32>
    %1 = vector.shape_cast %0 : vector<1x8x256xf32> to vector<8x256xf32>
    %2 = tpu.iota {dimensions = array<i32: 1>} : vector<8x256xi32>
    %c4_i32 = arith.constant 4 : i32
    %3 = vector.broadcast %c4_i32 : i32 to vector<8x256xi32>
    %4 = arith.shrsi %2, %3 : vector<8x256xi32>
    %c15_i32 = arith.constant 15 : i32
    %5 = vector.broadcast %c15_i32 : i32 to vector<8x256xi32>
    %6 = arith.andi %2, %5 : vector<8x256xi32>
    %c1_i32 = arith.constant 1 : i32
    %7 = vector.broadcast %c1_i32 : i32 to vector<8x256xi32>
    %8 = arith.cmpi sge, %4, %7 : vector<8x256xi32>
    %c15_i32_2 = arith.constant 15 : i32
    %9 = vector.broadcast %c15_i32_2 : i32 to vector<8x256xi32>
    %10 = arith.cmpi slt, %4, %9 : vector<8x256xi32>
    %c1_i32_3 = arith.constant 1 : i32
    %11 = vector.broadcast %c1_i32_3 : i32 to vector<8x256xi32>
    %12 = arith.cmpi sge, %6, %11 : vector<8x256xi32>
    %c15_i32_4 = arith.constant 15 : i32
    %13 = vector.broadcast %c15_i32_4 : i32 to vector<8x256xi32>
    %14 = arith.cmpi slt, %6, %13 : vector<8x256xi32>
    %c17_i32 = arith.constant 17 : i32
    %15 = tpu.dynamic_rotate %1 by %c17_i32 dim 1 : vector<8x256xf32>, i32 -> vector<8x256xf32>
    %16 = arith.andi %8, %12 : vector<8x256xi1>
    %cst = arith.constant 0.000000e+00 : f32
    %17 = vector.broadcast %cst : f32 to vector<8x256xf32>
    %18 = arith.select %16, %15, %17 : vector<8x256xi1>, vector<8x256xf32>
    %c16_i32 = arith.constant 16 : i32
    %19 = tpu.dynamic_rotate %1 by %c16_i32 dim 1 : vector<8x256xf32>, i32 -> vector<8x256xf32>
    %cst_5 = arith.constant 0.000000e+00 : f32
    %20 = vector.broadcast %cst_5 : f32 to vector<8x256xf32>
    %21 = arith.select %8, %19, %20 : vector<8x256xi1>, vector<8x256xf32>
    %c15_i32_6 = arith.constant 15 : i32
    %22 = tpu.dynamic_rotate %1 by %c15_i32_6 dim 1 : vector<8x256xf32>, i32 -> vector<8x256xf32>
    %23 = arith.andi %8, %14 : vector<8x256xi1>
    %cst_7 = arith.constant 0.000000e+00 : f32
    %24 = vector.broadcast %cst_7 : f32 to vector<8x256xf32>
    %25 = arith.select %23, %22, %24 : vector<8x256xi1>, vector<8x256xf32>
    %c1_i32_8 = arith.constant 1 : i32
    %26 = tpu.dynamic_rotate %1 by %c1_i32_8 dim 1 : vector<8x256xf32>, i32 -> vector<8x256xf32>
    %cst_9 = arith.constant 0.000000e+00 : f32
    %27 = vector.broadcast %cst_9 : f32 to vector<8x256xf32>
    %28 = arith.select %12, %26, %27 : vector<8x256xi1>, vector<8x256xf32>
    %c255_i32 = arith.constant 255 : i32
    %29 = tpu.dynamic_rotate %1 by %c255_i32 dim 1 : vector<8x256xf32>, i32 -> vector<8x256xf32>
    %cst_10 = arith.constant 0.000000e+00 : f32
    %30 = vector.broadcast %cst_10 : f32 to vector<8x256xf32>
    %31 = arith.select %14, %29, %30 : vector<8x256xi1>, vector<8x256xf32>
    %c241_i32 = arith.constant 241 : i32
    %32 = tpu.dynamic_rotate %1 by %c241_i32 dim 1 : vector<8x256xf32>, i32 -> vector<8x256xf32>
    %33 = arith.andi %10, %12 : vector<8x256xi1>
    %cst_11 = arith.constant 0.000000e+00 : f32
    %34 = vector.broadcast %cst_11 : f32 to vector<8x256xf32>
    %35 = arith.select %33, %32, %34 : vector<8x256xi1>, vector<8x256xf32>
    %c240_i32 = arith.constant 240 : i32
    %36 = tpu.dynamic_rotate %1 by %c240_i32 dim 1 : vector<8x256xf32>, i32 -> vector<8x256xf32>
    %cst_12 = arith.constant 0.000000e+00 : f32
    %37 = vector.broadcast %cst_12 : f32 to vector<8x256xf32>
    %38 = arith.select %10, %36, %37 : vector<8x256xi1>, vector<8x256xf32>
    %c239_i32 = arith.constant 239 : i32
    %39 = tpu.dynamic_rotate %1 by %c239_i32 dim 1 : vector<8x256xf32>, i32 -> vector<8x256xf32>
    %40 = arith.andi %10, %14 : vector<8x256xi1>
    %cst_13 = arith.constant 0.000000e+00 : f32
    %41 = vector.broadcast %cst_13 : f32 to vector<8x256xf32>
    %42 = arith.select %40, %39, %41 : vector<8x256xi1>, vector<8x256xf32>
    %43 = tpu.concatenate %18, %21, %25, %28, %1, %31, %35, %38, %42 in 0 : vector<8x256xf32>, vector<8x256xf32>, vector<8x256xf32>, vector<8x256xf32>, vector<8x256xf32>, vector<8x256xf32>, vector<8x256xf32>, vector<8x256xf32>, vector<8x256xf32> -> vector<72x256xf32>
    %c0_14 = arith.constant 0 : index
    %c0_15 = arith.constant 0 : index
    %44 = vector.load %arg2[%c0_14, %c0_15] : memref<8x72xf32, #tpu.memory_space<vmem>>, vector<8x72xf32>
    %cst_16 = arith.constant dense<0.000000e+00> : vector<8x256xf32>
    %45 = tpu.matmul %44, %43, %cst_16 {dimension_numbers = #tpu.dot_dimension_numbers<[1], [0], [0], [1], [0, 0, 1, 1], [], []>, precision = #tpu.contract_precision<fp32>} : vector<8x72xf32>, vector<72x256xf32>, vector<8x256xf32> -> vector<8x256xf32>
    %cst_17 = arith.constant dense<0.000000e+00> : vector<8xf32>
    %46 = vector.multi_reduction <add>, %45, %cst_17 [1] : vector<8x256xf32> to vector<8xf32>
    %47 = vector.shape_cast %46 : vector<8xf32> to vector<8x1xf32>
    %cst_18 = arith.constant 3.906250e-03 : f32
    %48 = vector.broadcast %cst_18 : f32 to vector<8x1xf32>
    %49 = arith.mulf %47, %48 : vector<8x1xf32>
    %50 = arith.mulf %45, %45 : vector<8x256xf32>
    %cst_19 = arith.constant dense<0.000000e+00> : vector<8xf32>
    %51 = vector.multi_reduction <add>, %50, %cst_19 [1] : vector<8x256xf32> to vector<8xf32>
    %52 = vector.shape_cast %51 : vector<8xf32> to vector<8x1xf32>
    %cst_20 = arith.constant 3.906250e-03 : f32
    %53 = vector.broadcast %cst_20 : f32 to vector<8x1xf32>
    %54 = arith.mulf %52, %53 : vector<8x1xf32>
    %55 = arith.mulf %49, %49 : vector<8x1xf32>
    %56 = arith.subf %54, %55 : vector<8x1xf32>
    %57 = vector.broadcast %49 : vector<8x1xf32> to vector<8x256xf32>
    %58 = arith.subf %45, %57 : vector<8x256xf32>
    %cst_21 = arith.constant 9.99999974E-6 : f32
    %59 = vector.broadcast %cst_21 : f32 to vector<8x1xf32>
    %60 = arith.addf %56, %59 : vector<8x1xf32>
    %61 = math.rsqrt %60 : vector<8x1xf32>
    %62 = vector.broadcast %61 : vector<8x1xf32> to vector<8x256xf32>
    %63 = arith.mulf %58, %62 : vector<8x256xf32>
    %cst_22 = arith.constant 0.000000e+00 : f32
    %64 = vector.broadcast %cst_22 : f32 to vector<8x256xf32>
    %65 = arith.maximumf %63, %64 : vector<8x256xf32>
    %c17_i32_23 = arith.constant 17 : i32
    %66 = tpu.dynamic_rotate %65 by %c17_i32_23 dim 1 : vector<8x256xf32>, i32 -> vector<8x256xf32>
    %67 = arith.andi %8, %12 : vector<8x256xi1>
    %cst_24 = arith.constant 0.000000e+00 : f32
    %68 = vector.broadcast %cst_24 : f32 to vector<8x256xf32>
    %69 = arith.select %67, %66, %68 : vector<8x256xi1>, vector<8x256xf32>
    %c16_i32_25 = arith.constant 16 : i32
    %70 = tpu.dynamic_rotate %65 by %c16_i32_25 dim 1 : vector<8x256xf32>, i32 -> vector<8x256xf32>
    %cst_26 = arith.constant 0.000000e+00 : f32
    %71 = vector.broadcast %cst_26 : f32 to vector<8x256xf32>
    %72 = arith.select %8, %70, %71 : vector<8x256xi1>, vector<8x256xf32>
    %c15_i32_27 = arith.constant 15 : i32
    %73 = tpu.dynamic_rotate %65 by %c15_i32_27 dim 1 : vector<8x256xf32>, i32 -> vector<8x256xf32>
    %74 = arith.andi %8, %14 : vector<8x256xi1>
    %cst_28 = arith.constant 0.000000e+00 : f32
    %75 = vector.broadcast %cst_28 : f32 to vector<8x256xf32>
    %76 = arith.select %74, %73, %75 : vector<8x256xi1>, vector<8x256xf32>
    %c1_i32_29 = arith.constant 1 : i32
    %77 = tpu.dynamic_rotate %65 by %c1_i32_29 dim 1 : vector<8x256xf32>, i32 -> vector<8x256xf32>
    %cst_30 = arith.constant 0.000000e+00 : f32
    %78 = vector.broadcast %cst_30 : f32 to vector<8x256xf32>
    %79 = arith.select %12, %77, %78 : vector<8x256xi1>, vector<8x256xf32>
    %c255_i32_31 = arith.constant 255 : i32
    %80 = tpu.dynamic_rotate %65 by %c255_i32_31 dim 1 : vector<8x256xf32>, i32 -> vector<8x256xf32>
    %cst_32 = arith.constant 0.000000e+00 : f32
    %81 = vector.broadcast %cst_32 : f32 to vector<8x256xf32>
    %82 = arith.select %14, %80, %81 : vector<8x256xi1>, vector<8x256xf32>
    %c241_i32_33 = arith.constant 241 : i32
    %83 = tpu.dynamic_rotate %65 by %c241_i32_33 dim 1 : vector<8x256xf32>, i32 -> vector<8x256xf32>
    %84 = arith.andi %10, %12 : vector<8x256xi1>
    %cst_34 = arith.constant 0.000000e+00 : f32
    %85 = vector.broadcast %cst_34 : f32 to vector<8x256xf32>
    %86 = arith.select %84, %83, %85 : vector<8x256xi1>, vector<8x256xf32>
    %c240_i32_35 = arith.constant 240 : i32
    %87 = tpu.dynamic_rotate %65 by %c240_i32_35 dim 1 : vector<8x256xf32>, i32 -> vector<8x256xf32>
    %cst_36 = arith.constant 0.000000e+00 : f32
    %88 = vector.broadcast %cst_36 : f32 to vector<8x256xf32>
    %89 = arith.select %10, %87, %88 : vector<8x256xi1>, vector<8x256xf32>
    %c239_i32_37 = arith.constant 239 : i32
    %90 = tpu.dynamic_rotate %65 by %c239_i32_37 dim 1 : vector<8x256xf32>, i32 -> vector<8x256xf32>
    %91 = arith.andi %10, %14 : vector<8x256xi1>
    %cst_38 = arith.constant 0.000000e+00 : f32
    %92 = vector.broadcast %cst_38 : f32 to vector<8x256xf32>
    %93 = arith.select %91, %90, %92 : vector<8x256xi1>, vector<8x256xf32>
    %94 = tpu.concatenate %69, %72, %76, %79, %65, %82, %86, %89, %93 in 0 : vector<8x256xf32>, vector<8x256xf32>, vector<8x256xf32>, vector<8x256xf32>, vector<8x256xf32>, vector<8x256xf32>, vector<8x256xf32>, vector<8x256xf32>, vector<8x256xf32> -> vector<72x256xf32>
    %c0_39 = arith.constant 0 : index
    %c0_40 = arith.constant 0 : index
    %95 = vector.load %arg3[%c0_39, %c0_40] : memref<8x72xf32, #tpu.memory_space<vmem>>, vector<8x72xf32>
    %cst_41 = arith.constant dense<0.000000e+00> : vector<8x256xf32>
    %96 = tpu.matmul %95, %94, %cst_41 {dimension_numbers = #tpu.dot_dimension_numbers<[1], [0], [0], [1], [0, 0, 1, 1], [], []>, precision = #tpu.contract_precision<fp32>} : vector<8x72xf32>, vector<72x256xf32>, vector<8x256xf32> -> vector<8x256xf32>
    %cst_42 = arith.constant dense<0.000000e+00> : vector<8xf32>
    %97 = vector.multi_reduction <add>, %96, %cst_42 [1] : vector<8x256xf32> to vector<8xf32>
    %98 = vector.shape_cast %97 : vector<8xf32> to vector<8x1xf32>
    %cst_43 = arith.constant 3.906250e-03 : f32
    %99 = vector.broadcast %cst_43 : f32 to vector<8x1xf32>
    %100 = arith.mulf %98, %99 : vector<8x1xf32>
    %101 = arith.mulf %96, %96 : vector<8x256xf32>
    %cst_44 = arith.constant dense<0.000000e+00> : vector<8xf32>
    %102 = vector.multi_reduction <add>, %101, %cst_44 [1] : vector<8x256xf32> to vector<8xf32>
    %103 = vector.shape_cast %102 : vector<8xf32> to vector<8x1xf32>
    %cst_45 = arith.constant 3.906250e-03 : f32
    %104 = vector.broadcast %cst_45 : f32 to vector<8x1xf32>
    %105 = arith.mulf %103, %104 : vector<8x1xf32>
    %106 = arith.mulf %100, %100 : vector<8x1xf32>
    %107 = arith.subf %105, %106 : vector<8x1xf32>
    %108 = vector.broadcast %100 : vector<8x1xf32> to vector<8x256xf32>
    %109 = arith.subf %96, %108 : vector<8x256xf32>
    %cst_46 = arith.constant 9.99999974E-6 : f32
    %110 = vector.broadcast %cst_46 : f32 to vector<8x1xf32>
    %111 = arith.addf %107, %110 : vector<8x1xf32>
    %112 = math.rsqrt %111 : vector<8x1xf32>
    %113 = vector.broadcast %112 : vector<8x1xf32> to vector<8x256xf32>
    %114 = arith.mulf %109, %113 : vector<8x256xf32>
    %115 = arith.addf %114, %1 : vector<8x256xf32>
    %c0_47 = arith.constant 0 : index
    %c0_48 = arith.constant 0 : index
    %c0_49 = arith.constant 0 : index
    %116 = vector.load %arg4[%c0_47, %c0_48, %c0_49] : memref<1x8x256xf32, #tpu.memory_space<vmem>>, vector<1x8x256xf32>
    %117 = vector.shape_cast %116 : vector<1x8x256xf32> to vector<8x256xf32>
    %118 = vector.shape_cast %115 : vector<8x256xf32> to vector<1x8x256xf32>
    tpu.vector_store %arg4[%c0_47, %c0_48, %c0_49], %118 {strides = array<i32>} : memref<1x8x256xf32, #tpu.memory_space<vmem>>, vector<1x8x256xf32>,
    return
  }
  func.func @transform_0(%arg0: i32) -> (i32, i32, i32) {
    %c0_i32 = arith.constant 0 : i32
    %c0_i32_0 = arith.constant 0 : i32
    %c0_i32_1 = arith.constant 0 : i32
    return %arg0, %c0_i32, %c0_i32_0 : i32, i32, i32
  }
  func.func @transform_1(%arg0: i32) -> (i32, i32) {
    %c0_i32 = arith.constant 0 : i32
    %c0_i32_0 = arith.constant 0 : i32
    %c0_i32_1 = arith.constant 0 : i32
    return %c0_i32, %c0_i32_0 : i32, i32
  }
  func.func @transform_2(%arg0: i32) -> (i32, i32) {
    %c0_i32 = arith.constant 0 : i32
    %c0_i32_0 = arith.constant 0 : i32
    %c0_i32_1 = arith.constant 0 : i32
    return %c0_i32, %c0_i32_0 : i32, i32
  }
  func.func @transform_3(%arg0: i32) -> (i32, i32, i32) {
    %c0_i32 = arith.constant 0 : i32
    %c0_i32_0 = arith.constant 0 : i32
    %c0_i32_1 = arith.constant 0 : i32
    return %arg0, %c0_i32, %c0_i32_0 : i32, i32, i32
  }
}

</mosaic_0001>

<bundles_post_ra>
// kernel: resblock_nchw.1
= control target key start
LH: loop header
LB: loop body
LE: loop exit
PB: predicated region body
PF: predicated region fallthrough
CT: control target
= control target key end

     0   :  { %s1803_s14 = smov 16   ;;  %s1804_s15 = smov 17   ;;  %v1810_v2 = vmov 0.0   ;;  %v16_v3 = vlaneseq  ;;  %vm2685_vm4 = vcmask 588800   ;;  %s2681_s0 = inlined_call_operand.vmem [shape: f32[1,8,256], index: 0, kind: input, shape index: {}]   ;;  %s2682_s1 = inlined_call_operand.vmem [shape: f32[8,72], index: 1, kind: input, shape index: {}]   ;;  %s2683_s2 = inlined_call_operand.vmem [shape: f32[8,72], index: 2, kind: input, shape index: {}]   ;;  %s2684_s3 = inlined_call_operand.vmem [shape: f32[1,8,256], index: 3, kind: output, shape index: {}]  }
   0x1   :  { %v1835_v0 = vld [vmem:[%s2681_s0] sm:$0xff]  ;;  %v1844_v1 = vld [vmem:[%s2681_s0 + $0x8] sm:$0xff]  ;;  %s1805_s18 = smov 15   ;;  %s1806_s19 = smov 1   ;;  %198 = vmatprep.mubr.f32.mxu0 %v1810_v2  ;;  %959 = vmatprep.mubr.f32.mxu1 %v1810_v2 }
   0x2   :  { %42 = vrot.lane.b32.xlu1 %v1835_v0, %s1803_s14  ;;  %31 = vrot.lane.b32.xlu0 %v1835_v0, %s1804_s15  ;;  %s1807_s20 = smov 127   ;;  %s1808_s21 = smov 113   ;;  %v1876_v4 = vand.u32 127, %v16_v3  ;;  %v111_v16 = vld [vmem:[%s2682_s1] sm:$0xff]  ;;  %v132_v39 = vand.u32 4294901760, %v1844_v1  ;;  %v134_v44 = vand.u32 4294901760, %v1835_v0 }
   0x3   :  { %s1809_s22 = smov 112   ;;  %s1811_s23 = smov 111   ;;  %v114_v19 = vsel %vm2685_vm4, %v111_v16, 0 }
   0x4   :  { %v18_v5 = vadd.s32 128, %v1876_v4  ;;  %v19_v6 = vshra.s32 %v1876_v4, 4  ;;  %v21_v7 = vand.u32 15, %v1876_v4  ;;  %vm2687_vm5 = vcmp.lt.s32.totalorder %v1876_v4, 16 }
   0x5   :  { %vm35_vm6 = vcmp.lt.s32.totalorder %v1876_v4, 17  ;;  %v1937_v35 = vand.u32 4294901760, %v114_v19  ;;  %vm2686_vm11 = vcmp.lt.s32.totalorder %v1876_v4, 15  ;;  %vm2690_vm13 = vcmp.lt.s32.totalorder %v1876_v4, 1 }
   0x6   :  { %44 = vrot.lane.b32.xlu1 %v1844_v1, %s1803_s14  ;;  %33 = vrot.lane.b32.xlu0 %v1844_v1, %s1804_s15  ;;  %v20_v8 = vshra.s32 %v18_v5, 4  ;;  %v22_v9 = vand.u32 15, %v18_v5  ;;  %vm1881_vm0 = vcmp.ge.s32.totalorder %v19_v6, 1  ;;  %vm1885_vm1 = vcmp.ge.s32.totalorder %v21_v7, 1 }
   0x7   :  { %vm38_vm7 = vmand %vm1881_vm0, %vm1885_vm1  ;;  %vm1933_vm9 = vcmp.lt.s32.totalorder %v21_v7, 15  ;;  %v1965_v45 = vsub.f32 %v114_v19, %v1937_v35  ;;  %vm2688_vm15 = vcmp.lt.s32.totalorder %v1876_v4, 127  ;;  %vm1969_vm4 = vcmp.lt.s32.totalorder %v19_v6, 15 }
   0x8   :  { %vm1889_vm2 = vcmp.ge.s32.totalorder %v20_v8, 1  ;;  %vm1893_vm3 = vcmp.ge.s32.totalorder %v22_v9, 1  ;;  %vm1939_vm10 = vcmp.lt.s32.totalorder %v22_v9, 15  ;;  %vm2689_vm12 = vmand %vm1881_vm0, %vm1933_vm9  ;;  %v1999_v53 = vsub.f32 %v1844_v1, %v132_v39 }
   0x9   :  { %vm39_vm8 = vmand %vm1889_vm2, %vm1893_vm3  ;;  %v2006_v58 = vsub.f32 %v1835_v0, %v134_v44  ;;  %v2695_v59 = vand.u32 4294901760, %v1965_v45 }
   0xa   :  { %53 = vrot.lane.b32.xlu1 %v1844_v1, %s1805_s18  ;;  %51 = vrot.lane.b32.xlu0 %v1835_v0, %s1805_s18  ;;  %vm2691_vm14 = vmand %vm1889_vm2, %vm1939_vm10 }
   0xe   :  { %64 = vrot.lane.b32.xlu1 %v1844_v1, %s1806_s19  ;;  %62 = vrot.lane.b32.xlu0 %v1835_v0, %s1806_s19 }
  0x12   :  { %73 = vrot.lane.b32.xlu1 %v1844_v1, %s1807_s20  ;;  %71 = vrot.lane.b32.xlu0 %v1835_v0, %s1807_s20 }
  0x16   :  { %82 = vrot.lane.b32.xlu1 %v1844_v1, %s1808_s21  ;;  %80 = vrot.lane.b32.xlu0 %v1835_v0, %s1808_s21 }
  0x1a   :  { %93 = vrot.lane.b32.xlu1 %v1844_v1, %s1809_s22  ;;  %91 = vrot.lane.b32.xlu0 %v1835_v0, %s1809_s22 }
  0x1e   :  { %102 = vrot.lane.b32.xlu1 %v1844_v1, %s1811_s23  ;;  %100 = vrot.lane.b32.xlu0 %v1835_v0, %s1811_s23 }
  0x74   :  { %v43_v12 = vpop.permute.xlu1 %42  ;;  %v32_v13 = vpop.permute.xlu0 %31 }
  0x78   :  { %v45_v17 = vpop.permute.xlu1 %44  ;;  %v34_v18 = vpop.permute.xlu0 %33 }
  0x79   :  { %v47_v20 = vsel %vm2687_vm5, %v43_v12, %v45_v17  ;;  %v48_v21 = vsel %vm2687_vm5, %v45_v17, %v43_v12  ;;  %v36_v22 = vsel %vm35_vm6, %v32_v13, %v34_v18  ;;  %v37_v23 = vsel %vm35_vm6, %v34_v18, %v32_v13 }
  0x7a   :  { %v49_v24 = vsel %vm1881_vm0, %v48_v21, 0.0  ;;  %v50_v25 = vsel %vm1889_vm2, %v47_v20, 0.0  ;;  %v40_v26 = vsel %vm38_vm7, %v37_v23, 0.0  ;;  %v41_v27 = vsel %vm39_vm8, %v36_v22, 0.0 }
  0x7b   :  { %v120_v28 = vand.u32 4294901760, %v50_v25  ;;  %v122_v29 = vand.u32 4294901760, %v49_v24  ;;  %v116_v30 = vand.u32 4294901760, %v41_v27  ;;  %v118_v31 = vand.u32 4294901760, %v40_v26 }
  0x7c   :  { %v54_v32 = vpop.permute.xlu1 %53  ;;  %v52_v34 = vpop.permute.xlu0 %51  ;;  %vm84_vm5 = vcmp.lt.s32.totalorder %v1876_v4, 113  ;;  %v2694_v12 = vand.u32 4294901760, %v1999_v53  ;;  %v2705_v22 = vand.u32 4294901760, %v2006_v58 }
  0x7d   :  { %v1944_v37 = vpack.c.bf16 %v120_v28, %v116_v30  ;;  %v1946_v38 = vpack.c.bf16 %v122_v29, %v118_v31  ;;  %v56_v40 = vsel %vm2686_vm11, %v52_v34, %v54_v32  ;;  %v57_v41 = vsel %vm2686_vm11, %v54_v32, %v52_v34 }
  0x7e   :  { %vm1977_vm11 = vcmp.lt.s32.totalorder %v20_v8, 15  ;;  %v1982_v50 = vsub.f32 %v49_v24, %v122_v29  ;;  %v1989_v51 = vsel %vm2689_vm12, %v57_v41, 0.0  ;;  %v61_v52 = vsel %vm2691_vm14, %v56_v40, 0.0 }
  0x7f   :  { %1577 = vmatprep.subr.bf16.mxu0 %v1944_v37  ;;  %v2009_v60 = vsub.f32 %v41_v27, %v116_v30  ;;  %v2011_v61 = vsub.f32 %v40_v26, %v118_v31  ;;  %v124_v3 = vand.u32 4294901760, %v61_v52  ;;  %v126_v5 = vand.u32 4294901760, %v1989_v51  ;;  %vm88_vm14 = vmand %vm1977_vm11, %vm1893_vm3 }
  0x80   :  { %v65_v42 = vpop.permute.xlu1 %64  ;;  %v63_v43 = vpop.permute.xlu0 %62  ;;  %1579 = vmatpush1.bf16.msra.mxu0 %v1946_v38  ;;  %v2018_v8 = vsub.f32 %v50_v25, %v120_v28  ;;  %v2696_v0 = vand.u32 4294901760, %v1982_v50  ;;  %vm104_vm12 = vcmp.lt.s32.totalorder %v1876_v4, 111  ;;  %v2045_v26 = vsub.f32 %v1965_v45, %v2695_v59 }
  0x81   :  { %v67_v47 = vsel %vm2690_vm13, %v63_v43, %v65_v42  ;;  %v68_v48 = vsel %vm2690_vm13, %v65_v42, %v63_v43  ;;  %v2702_v23 = vand.u32 4294901760, %v2009_v60  ;;  %v2700_v24 = vand.u32 4294901760, %v2011_v61  ;;  %vm2692_vm13 = vmand %vm1969_vm4, %vm1885_vm1 }
  0x82   :  { %v69_v54 = vsel %vm1885_vm1, %v68_v48, 0.0  ;;  %v70_v55 = vsel %vm1893_vm3, %v67_v47, 0.0  ;;  %v2061_v30 = vsub.f32 %v1999_v53, %v2694_v12  ;;  %v2701_v31 = vand.u32 4294901760, %v2018_v8 }
  0x83   :  { %v128_v62 = vand.u32 4294901760, %v70_v55  ;;  %v130_v63 = vand.u32 4294901760, %v69_v54  ;;  %v2067_v32 = vsub.f32 %v1982_v50, %v2696_v0  ;;  %v2069_v34 = vsub.f32 %v61_v52, %v124_v3 }
  0x84   :  { %v74_v56 = vpop.permute.xlu1 %73  ;;  %v72_v57 = vpop.permute.xlu0 %71  ;;  %v219_v1 = vsub.f32 %v2011_v61, %v2700_v24 }
  0x85   :  { %v76_v6 = vsel %vm2688_vm15, %v72_v57, %v74_v56  ;;  %v77_v7 = vsel %vm2688_vm15, %v74_v56, %v72_v57  ;;  %v2026_v17 = vpack.c.bf16 %v128_v62, %v124_v3  ;;  %v2028_v19 = vpack.c.bf16 %v130_v63, %v126_v5 }
  0x86   :  { %v78_v9 = vsel %vm1933_vm9, %v76_v6, 0.0  ;;  %v79_v13 = vsel %vm1939_vm10, %v77_v7, 0.0  ;;  %vm2693_vm15 = vcmp.lt.s32.totalorder %v1876_v4, 112  ;;  %v2047_v27 = vsub.f32 %v70_v55, %v128_v62 }
  0x87   :  { %v138_v16 = vand.u32 4294901760, %v78_v9  ;;  %v136_v21 = vand.u32 4294901760, %v79_v13  ;;  %1581 = vmatprep.subr.bf16.mxu0 %v2026_v17  ;;  %v2075_v43 = vsub.f32 %v69_v54, %v130_v63  ;;  %v213_v54 = vsub.f32 %v2009_v60, %v2702_v23 }
  0x88   :  { %v83_v18 = vpop.permute.xlu1 %82  ;;  %v81_v20 = vpop.permute.xlu0 %80  ;;  %1583 = vmatpush1.bf16.msra.mxu0 %v2028_v19  ;;  %v2697_v55 = vand.u32 4294901760, %v2047_v27  ;;  %v2111_v63 = vsub.f32 %v1989_v51, %v126_v5 }
  0x89   :  { %v85_v25 = vsel %vm84_vm5, %v81_v20, %v83_v18  ;;  %v86_v28 = vsel %vm84_vm5, %v83_v18, %v81_v20  ;;  %v2056_v29 = vpack.c.bf16 %v138_v16, %v134_v44  ;;  %v2073_v40 = vpack.c.bf16 %v136_v21, %v132_v39 }
  0x8a   :  { %v89_v44 = vsel %vm2692_vm13, %v85_v25, 0.0  ;;  %v90_v39 = vsel %vm88_vm14, %v86_v28, 0.0  ;;  %v2101_v56 = vsub.f32 %v79_v13, %v136_v21  ;;  %vm2708_vm13 = vmand %vm1977_vm11, %vm1939_vm10  ;;  %v225_v13 = vsub.f32 %v2018_v8, %v2701_v31 }
  0x8b   :  { %1585 = vmatprep.subr.bf16.mxu0 %v2073_v40  ;;  %v142_v3 = vand.u32 4294901760, %v89_v44  ;;  %v2699_v20 = vand.u32 4294901760, %v2069_v34  ;;  %v2698_v21 = vand.u32 4294901760, %v2075_v43  ;;  %v140_v25 = vand.u32 4294901760, %v90_v39 }
  0x8c   :  { %v94_v41 = vpop.permute.xlu1 %93  ;;  %v92_v42 = vpop.permute.xlu0 %91  ;;  %1587 = vmatpush1.bf16.msra.mxu0 %v2056_v29  ;;  %v214_v12 = vand.u32 4294901760, %v213_v54  ;;  %v226_v59 = vand.u32 4294901760, %v225_v13  ;;  %v262_v31 = vand.u32 4294901760, %v2061_v30 }
  0x8d   :  { %v96_v47 = vsel %vm2693_vm15, %v92_v42, %v94_v41  ;;  %v97_v48 = vsel %vm2693_vm15, %v94_v41, %v92_v42  ;;  %v2120_v41 = vsub.f32 %v78_v9, %v138_v16  ;;  %vm2707_vm15 = vmand %vm1969_vm4, %vm1933_vm9  ;;  %v2145_v0 = vsub.f32 %v90_v39, %v140_v25 }
  0x8e   :  { %v98_v52 = vsel %vm1969_vm4, %v96_v47, 0.0  ;;  %v99_v57 = vsel %vm1977_vm11, %v97_v48, 0.0  ;;  %v2703_v47 = vand.u32 4294901760, %v2101_v56  ;;  %v249_v48 = vsub.f32 %v2047_v27, %v2697_v55 }
  0x8f   :  { %v146_v62 = vand.u32 4294901760, %v98_v52  ;;  %v144_v6 = vand.u32 4294901760, %v99_v57  ;;  %v255_v39 = vsub.f32 %v2075_v43, %v2698_v21  ;;  %v278_v54 = vand.u32 4294901760, %v2120_v41 }
  0x90   :  { %v103_v7 = vpop.permute.xlu1 %102  ;;  %v101_v18 = vpop.permute.xlu0 %100  ;;  %v250_v55 = vand.u32 4294901760, %v249_v48  ;;  %v284_v24 = vand.u32 4294901760, %v2145_v0 }
  0x91   :  { %v106_v28 = vsel %vm104_vm12, %v103_v7, %v101_v18  ;;  %v105_v51 = vsel %vm104_vm12, %v101_v18, %v103_v7  ;;  %v2133_v42 = vpack.c.bf16 %v146_v62, %v142_v3  ;;  %v2136_v9 = vsub.f32 %v99_v57, %v144_v6 }
  0x92   :  { %v110_v5 = vsel %vm2708_vm13, %v106_v28, 0.0  ;;  %v2138_v16 = vpack.c.bf16 %v144_v6, %v140_v25  ;;  %v232_v7 = vand.u32 4294901760, %v2067_v32  ;;  %v2704_v18 = vand.u32 4294901760, %v2111_v63 }
  0x93   :  { %v109_v57 = vsel %vm2707_vm15, %v105_v51, 0.0  ;;  %v2152_v6 = vand.u32 4294901760, %v110_v5  ;;  %v237_v32 = vsub.f32 %v2069_v34, %v2699_v20  ;;  %v220_v28 = vand.u32 4294901760, %v219_v1 }
  0x94   :  { %1589 = vmatprep.subr.bf16.mxu0 %v2138_v16  ;;  %v2162_v13 = vsub.f32 %v98_v52, %v146_v62  ;;  %v296_v25 = vand.u32 4294901760, %v2136_v9  ;;  %v203_v51 = vand.u32 4294901760, %v2045_v26  ;;  %v273_v1 = vsub.f32 %v2101_v56, %v2703_v47 }
  0x95   :  { %1591 = vmatpush1.bf16.msra.mxu0 %v2133_v42  ;;  %v243_v21 = vsub.f32 %v2111_v63, %v2704_v18  ;;  %v2174_v20 = vsub.f32 %v89_v44, %v142_v3  ;;  %v2176_v52 = vand.u32 4294901760, %v109_v57  ;;  %v267_v62 = vsub.f32 %v2006_v58, %v2705_v22 }
  0x96   :  { %149 = vmatprep.subr.mxu0 %v2152_v6  ;;  %v1592_v26 = vpack.c.bf16 %v226_v59, %v214_v12  ;;  %v238_v48 = vand.u32 4294901760, %v237_v32  ;;  %v256_v23 = vand.u32 4294901760, %v255_v39  ;;  %v279_v47 = vsub.f32 %v2120_v41, %v278_v54 }
  0x97   :  { %v2706_v44 = vand.u32 4294901760, %v2162_v13  ;;  %v1594_v3 = vpack.c.bf16 %v232_v7, %v220_v28  ;;  %v2189_v18 = vsub.f32 %v110_v5, %v2152_v6  ;;  %v274_v59 = vand.u32 4294901760, %v273_v1 }
  0x98   :  { %v1596_v22 = vpack.c.bf16 %v250_v55, %v238_v48  ;;  %v297_v12 = vsub.f32 %v2136_v9, %v296_v25  ;;  %v244_v30 = vand.u32 4294901760, %v243_v21  ;;  %v290_v32 = vand.u32 4294901760, %v2174_v20 }
  0x99   :  { %151 = vmatpush1.msra.mxu0 %v2176_v52  ;;  %v268_v39 = vand.u32 4294901760, %v267_v62  ;;  %v285_v5 = vsub.f32 %v2145_v0, %v284_v24  ;;  %v280_v7 = vand.u32 4294901760, %v279_v47  ;;  %v303_v55 = vsub.f32 %v2162_v13, %v2706_v44 }
  0x9a   :  { %1593 = vmatprep.subr.bf16.mxu0 %v1592_v26  ;;  %204 = vmatmul.mubr.f32.vlgmr.msra.gmra.mrb[0].mxu0 %v203_v51  ;;  %v2203_v28 = vsub.f32 %v109_v57, %v2176_v52  ;;  %v1598_v21 = vpack.c.bf16 %v256_v23, %v244_v30  ;;  %v1600_v51 = vpack.c.bf16 %v274_v59, %v262_v31  ;;  %v298_v1 = vand.u32 4294901760, %v297_v12 }
  0x9b   :  { %1595 = vmatpush1.bf16.msra.mxu0 %v1594_v3  ;;  %364 = vmatprep.mubr.f32.mxu0 %v1810_v2  ;;  %v308_v26 = vand.u32 4294901760, %v2189_v18  ;;  %v286_v62 = vand.u32 4294901760, %v285_v5  ;;  %v304_v47 = vand.u32 4294901760, %v303_v55  ;;  %v1602_v3 = vpack.c.bf16 %v280_v7, %v268_v39 }
  0x9c   :  { %1597 = vmatprep.subr.bf16.mxu0 %v1596_v22  ;;  %v291_v22 = vsub.f32 %v2174_v20, %v290_v32  ;;  %v314_v48 = vand.u32 4294901760, %v2203_v28  ;;  %v1608_v39 = vpack.c.bf16 %v2018_v8, %v2009_v60  ;;  %v1610_v5 = vpack.c.bf16 %v1982_v50, %v2011_v61 }
  0x9d   :  { %v1604_v44 = vpack.c.bf16 %v298_v1, %v286_v62  ;;  %v309_v23 = vsub.f32 %v2189_v18, %v308_v26  ;;  %v1614_v7 = vpack.c.bf16 %v2075_v43, %v2111_v63  ;;  %v1616_v55 = vpack.c.bf16 %v2101_v56, %v1999_v53 }
  0x9e   :  { %v292_v31 = vand.u32 4294901760, %v291_v22  ;;  %v315_v59 = vsub.f32 %v2203_v28, %v314_v48  ;;  %v1622_v1 = vpack.c.bf16 %v2162_v13, %v2174_v20  ;;  %v2730_v22 = vand.u32 4294901760, %v2009_v60 }
  0x9f   :  { %1599 = vmatpush1.bf16.msra.mxu0 %v1598_v21  ;;  %v310_v12 = vand.u32 4294901760, %v309_v23  ;;  %v1618_v21 = vpack.c.bf16 %v2120_v41, %v2006_v58  ;;  %v2731_v62 = vand.u32 4294901760, %v2018_v8  ;;  %v2733_v23 = vand.u32 4294901760, %v1982_v50 }
  0xa0   :  { %1601 = vmatprep.subr.bf16.mxu0 %v1600_v51  ;;  %v1606_v57 = vpack.c.bf16 %v304_v47, %v292_v31  ;;  %v316_v30 = vand.u32 4294901760, %v315_v59  ;;  %v1620_v51 = vpack.c.bf16 %v2136_v9, %v2145_v0  ;;  %v2735_v59 = vand.u32 4294901760, %v2069_v34 }
  0xa1   :  { %v1640_v47 = vpack.c.bf16 %v2731_v62, %v2730_v22  ;;  %v2737_v60 = vand.u32 4294901760, %v2111_v63  ;;  %v2739_v50 = vand.u32 4294901760, %v1999_v53  ;;  %v1652_v63 = vpack.c.bf16 %v296_v25, %v284_v24 }
  0xa2   :  { %v2742_v53 = vand.u32 4294901760, %v2162_v13  ;;  %vm2743_vm15 = vcmp.lt.s32.totalorder %v1876_v4, 16 }
  0xa3   :  { %1603 = vmatpush1.bf16.msra.mxu0 %v1602_v3  ;;  %v2732_v3 = vand.u32 4294901760, %v2011_v61  ;;  %v2738_v61 = vand.u32 4294901760, %v2075_v43  ;;  %vm2744_vm13 = vmmov %vm2743_vm15 }
  0xa4   :  { %1605 = vmatprep.subr.bf16.mxu0 %v1604_v44  ;;  %v1612_v44 = vpack.c.bf16 %v2047_v27, %v2069_v34  ;;  %v2741_v34 = vand.u32 4294901760, %v2006_v58  ;;  %v1654_v43 = vpack.c.bf16 %v2742_v53, %v290_v32 }
  0xa5   :  { %v1642_v31 = vpack.c.bf16 %v2733_v23, %v2732_v3  ;;  %v1646_v8 = vpack.c.bf16 %v2738_v61, %v2737_v60 }
  0xa7   :  { %1607 = vmatpush1.bf16.msra.mxu0 %v1606_v57  ;;  %v2734_v57 = vand.u32 4294901760, %v1965_v45 }
  0xa8   :  { %311 = vmatprep.subr.mxu0 %v310_v12  ;;  %v2736_v12 = vand.u32 4294901760, %v2047_v27  ;;  %v1650_v27 = vpack.c.bf16 %v278_v54, %v2741_v34 }
  0xab   :  { %317 = vmatpush1.msra.mxu0 %v316_v30  ;;  %v1644_v30 = vpack.c.bf16 %v2736_v12, %v2735_v59 }
  0xac   :  { %1609 = vmatprep.subr.bf16.mxu0 %v1608_v39  ;;  %366 = vmatmul.mubr.f32.vlgmr.msra.gmra.mrb[0].mxu0 %v1937_v35  ;;  %v2740_v39 = vand.u32 4294901760, %v2101_v56 }
  0xad   :  { %1611 = vmatpush1.bf16.msra.mxu0 %v1610_v5  ;;  %472 = vmatprep.mubr.f32.mxu0 %v1810_v2 }
  0xae   :  { %1613 = vmatprep.subr.bf16.mxu0 %v1612_v44 }
  0xb1   :  { %1615 = vmatpush1.bf16.msra.mxu0 %v1614_v7 }
  0xb2   :  { %1617 = vmatprep.subr.bf16.mxu0 %v1616_v55 }
  0xb5   :  { %1619 = vmatpush1.bf16.msra.mxu0 %v1618_v21  ;;  %v873_v21 = vld [vmem:[%s2683_s2] sm:$0xff] }
  0xb6   :  { %1621 = vmatprep.subr.bf16.mxu0 %v1620_v51 }
  0xb9   :  { %1623 = vmatpush1.bf16.msra.mxu0 %v1622_v1 }
  0xba   :  { %422 = vmatprep.subr.mxu0 %v2189_v18 }
  0xbd   :  { %425 = vmatpush1.msra.mxu0 %v2203_v28 }
  0xbe   :  { %1625 = vmatprep.subr.bf16.mxu0 %v1944_v37  ;;  %475 = vmatmul.mubr.f32.vlgmr.msra.gmra.mrb[0].mxu0 %v1965_v45  ;;  %v1648_v45 = vpack.c.bf16 %v2740_v39, %v2739_v50 }
  0xbf   :  { %1627 = vmatpush1.bf16.msra.mxu0 %v1946_v38  ;;  %563 = vmatprep.mubr.f32.mxu0 %v1810_v2 }
  0xc0   :  { %1629 = vmatprep.subr.bf16.mxu0 %v2026_v17 }
  0xc3   :  { %1631 = vmatpush1.bf16.msra.mxu0 %v2028_v19 }
  0xc4   :  { %1633 = vmatprep.subr.bf16.mxu0 %v2073_v40 }
  0xc7   :  { %1635 = vmatpush1.bf16.msra.mxu0 %v2056_v29 }
  0xc8   :  { %1637 = vmatprep.subr.bf16.mxu0 %v2138_v16 }
  0xcb   :  { %1639 = vmatpush1.bf16.msra.mxu0 %v2133_v42 }
  0xcc   :  { %514 = vmatprep.subr.mxu0 %v2152_v6 }
  0xcf   :  { %516 = vmatpush1.msra.mxu0 %v2176_v52 }
  0xd0   :  { %1641 = vmatprep.subr.bf16.mxu0 %v1640_v47  ;;  %567 = vmatmul.mubr.f32.vlgmr.msra.gmra.mrb[0].mxu0 %v2734_v57 }
  0xd1   :  { %1643 = vmatpush1.bf16.msra.mxu0 %v1642_v31  ;;  %691 = vmatprep.mubr.f32.mxu0 %v1810_v2 }
  0xd2   :  { %1645 = vmatprep.subr.bf16.mxu0 %v1644_v30 }
  0xd5   :  { %1647 = vmatpush1.bf16.msra.mxu0 %v1646_v8 }
  0xd6   :  { %1649 = vmatprep.subr.bf16.mxu0 %v1648_v45 }
  0xd9   :  { %1651 = vmatpush1.bf16.msra.mxu0 %v1650_v27 }
  0xda   :  { %1653 = vmatprep.subr.bf16.mxu0 %v1652_v63 }
  0xdd   :  { %1655 = vmatpush1.bf16.msra.mxu0 %v1654_v43 }
  0xde   :  { %640 = vmatprep.subr.mxu0 %v308_v26 }
  0xe1   :  { %644 = vmatpush1.msra.mxu0 %v314_v48 }
  0xe2   :  { %1657 = vmatprep.subr.bf16.mxu0 %v1944_v37  ;;  %693 = vmatmul.mubr.f32.vlgmr.msra.gmra.mrb[0].mxu0 %v1937_v35 }
  0xe3   :  { %1659 = vmatpush1.bf16.msra.mxu0 %v1946_v38  ;;  %781 = vmatprep.mubr.f32.mxu0 %v1810_v2 }
  0xe4   :  { %1661 = vmatprep.subr.bf16.mxu0 %v2026_v17 }
  0xe7   :  { %1663 = vmatpush1.bf16.msra.mxu0 %v2028_v19 }
  0xe8   :  { %1665 = vmatprep.subr.bf16.mxu0 %v2073_v40 }
  0xeb   :  { %1667 = vmatpush1.bf16.msra.mxu0 %v2056_v29 }
  0xec   :  { %1669 = vmatprep.subr.bf16.mxu0 %v2138_v16 }
  0xef   :  { %1671 = vmatpush1.bf16.msra.mxu0 %v2133_v42 }
  0xf0   :  { %732 = vmatprep.subr.mxu0 %v2152_v6 }
  0xf3   :  { %734 = vmatpush1.msra.mxu0 %v2176_v52 }
  0xf4   :  { %783 = vmatmul.mubr.f32.vlgmr.msra.gmra.mrb[0].mxu0 %v1937_v35 }
 0x1c7   :  { %v784_v37 = vpop.f32.mrb[0].mxu0 }
 0x1c8   :  { %v786_v38 = vpop.f32.mrb[1].mxu0  ;;  %v793_v58 = vmul.f32 %v784_v37, %v784_v37 }
 0x1c9   :  { %v794_v0 = vmul.f32 %v786_v38, %v786_v38  ;;  %v789_v17 = vadd.f32 %v786_v38, %v784_v37 }
 0x1cb   :  { %790 = vadd.xlane.f32.xlu0 %v789_v17  ;;  %v795_v19 = vadd.f32 %v794_v0, %v793_v58 }
 0x1cd   :  { %796 = vadd.xlane.f32.xlu1 %v795_v19 }
 0x258   :  { %v791_v24 = vpop.xlane.xlu0 %790 }
 0x259   :  { %v792_v29 = vmul.f32 0.00390625, %v791_v24 }
 0x25a   :  { %v797_v40 = vpop.xlane.xlu1 %796 }
 0x25b   :  { %v798_v56 = vmul.f32 0.00390625, %v797_v40  ;;  %v799_v20 = vmul.f32 %v792_v29, %v792_v29  ;;  %v801_v9 = vsub.f32 %v784_v37, %v792_v29  ;;  %v802_v16 = vsub.f32 %v786_v38, %v792_v29 }
 0x25d   :  { %v800_v41 = vsub.f32 %v798_v56, %v799_v20 }
 0x25f   :  { %v803_v42 = vadd.f32 1e-05, %v800_v41 }
 0x261   :  { %1797 = vrsqrt.f32 %v803_v42 }
 0x26b   :  { %v1798_v18 = vpop.eup %1797 }
 0x26c   :  { %v805_v35 = vmul.f32 %v1798_v18, %v801_v9  ;;  %v806_v6 = vmul.f32 %v1798_v18, %v802_v16 }
 0x26e   :  { %v2300_v54 = vmax.f32 %v805_v35, 0.0  ;;  %v2302_v13 = vmax.f32 %v806_v6, 0.0 }
 0x270   :  { %811 = vrot.lane.b32.xlu1 %v2302_v13, %s1804_s15  ;;  %809 = vrot.lane.b32.xlu0 %v2300_v54, %s1804_s15  ;;  %v893_v39 = vand.u32 4294901760, %v2302_v13  ;;  %v895_v37 = vand.u32 4294901760, %v2300_v54 }
 0x272   :  { %v2398_v24 = vsub.f32 %v2302_v13, %v893_v39  ;;  %v2415_v35 = vsub.f32 %v2300_v54, %v895_v37 }
 0x274   :  { %819 = vrot.lane.b32.xlu1 %v2302_v13, %s1803_s14  ;;  %817 = vrot.lane.b32.xlu0 %v2300_v54, %s1803_s14 }
 0x278   :  { %827 = vrot.lane.b32.xlu1 %v2302_v13, %s1805_s18  ;;  %825 = vrot.lane.b32.xlu0 %v2300_v54, %s1805_s18 }
 0x27c   :  { %835 = vrot.lane.b32.xlu1 %v2302_v13, %s1806_s19  ;;  %833 = vrot.lane.b32.xlu0 %v2300_v54, %s1806_s19 }
 0x280   :  { %843 = vrot.lane.b32.xlu1 %v2302_v13, %s1807_s20  ;;  %841 = vrot.lane.b32.xlu0 %v2300_v54, %s1807_s20 }
 0x284   :  { %851 = vrot.lane.b32.xlu1 %v2302_v13, %s1808_s21  ;;  %849 = vrot.lane.b32.xlu0 %v2300_v54, %s1808_s21 }
 0x288   :  { %859 = vrot.lane.b32.xlu1 %v2302_v13, %s1809_s22  ;;  %857 = vrot.lane.b32.xlu0 %v2300_v54, %s1809_s22 }
 0x28c   :  { %867 = vrot.lane.b32.xlu1 %v2302_v13, %s1811_s23  ;;  %865 = vrot.lane.b32.xlu0 %v2300_v54, %s1811_s23 }
 0x2e2   :  { %v812_v25 = vpop.permute.xlu1 %811  ;;  %v810_v52 = vpop.permute.xlu0 %809 }
 0x2e3   :  { %v813_v32 = vsel %vm35_vm6, %v810_v52, %v812_v25  ;;  %v814_v28 = vsel %vm35_vm6, %v812_v25, %v810_v52  ;;  %vm2745_vm6 = vcmask 588800  }
 0x2e4   :  { %v815_v5 = vsel %vm38_vm7, %v814_v28, 0.0  ;;  %v816_v44 = vsel %vm39_vm8, %v813_v32, 0.0  ;;  %v875_v57 = vsel %vm2745_vm6, %v873_v21, 0  ;;  %vm2746_vm7 = vcmp.lt.s32.totalorder %v1876_v4, 15 }
 0x2e5   :  { %v877_v47 = vand.u32 4294901760, %v816_v44  ;;  %v879_v3 = vand.u32 4294901760, %v815_v5  ;;  %v2368_v60 = vand.u32 4294901760, %v875_v57  ;;  %vm2747_vm8 = vmmov %vm2746_vm7  ;;  %v1021_v21 = vand.u32 4294901760, %v2398_v24 }
 0x2e6   :  { %v820_v26 = vpop.permute.xlu1 %819  ;;  %v818_v48 = vpop.permute.xlu0 %817 }
 0x2e7   :  { %v821_v7 = vsel %vm2743_vm15, %v818_v48, %v820_v26  ;;  %v822_v55 = vsel %vm2744_vm13, %v820_v26, %v818_v48  ;;  %vm2748_vm13 = vmand %vm1889_vm2, %vm1939_vm10  ;;  %vm2749_vm15 = vcmp.lt.s32.totalorder %v1876_v4, 1  ;;  %v2395_v38 = vsub.f32 %v875_v57, %v2368_v60 }
 0x2e8   :  { %v823_v51 = vsel %vm1881_vm0, %v822_v55, 0.0  ;;  %v824_v1 = vsel %vm1889_vm2, %v821_v7, 0.0  ;;  %vm2750_vm6 = vmmov %vm2749_vm15  ;;  %v2400_v29 = vsub.f32 %v816_v44, %v877_v47  ;;  %v2418_v13 = vsub.f32 %v815_v5, %v879_v3 }
 0x2e9   :  { %v881_v22 = vand.u32 4294901760, %v824_v1  ;;  %v883_v62 = vand.u32 4294901760, %v823_v51  ;;  %vm2751_vm2 = vmand %vm1881_vm0, %vm1933_vm9  ;;  %vm2752_vm0 = vcmp.lt.s32.totalorder %v1876_v4, 127  ;;  %v962_v6 = vand.u32 4294901760, %v2395_v38 }
 0x2ea   :  { %v828_v23 = vpop.permute.xlu1 %827  ;;  %v826_v31 = vpop.permute.xlu0 %825  ;;  %v973_v26 = vand.u32 4294901760, %v2400_v29 }
 0x2eb   :  { %v829_v59 = vsel %vm2746_vm7, %v826_v31, %v828_v23  ;;  %v2364_v12 = vpack.c.bf16 %v881_v22, %v877_v47  ;;  %v2366_v30 = vpack.c.bf16 %v883_v62, %v879_v3  ;;  %v830_v61 = vsel %vm2747_vm8, %v828_v23, %v826_v31  ;;  %vm2753_vm7 = vmmov %vm2752_vm0 }
 0x2ec   :  { %v832_v45 = vsel %vm2748_vm13, %v829_v59, 0.0  ;;  %v831_v14 = vsel %vm2751_vm2, %v830_v61, 0.0  ;;  %v2402_v10 = vsub.f32 %v823_v51, %v883_v62  ;;  %v2420_v25 = vsub.f32 %v824_v1, %v881_v22 }
 0x2ed   :  { %1673 = vmatprep.subr.bf16.mxu1 %v2364_v12  ;;  %v885_v58 = vand.u32 4294901760, %v832_v45  ;;  %v887_v20 = vand.u32 4294901760, %v831_v14  ;;  %v2439_v55 = vsub.f32 %v2395_v38, %v962_v6  ;;  %v1027_v51 = vand.u32 4294901760, %v2415_v35 }
 0x2ee   :  { %v836_v8 = vpop.permute.xlu1 %835  ;;  %v834_v50 = vpop.permute.xlu0 %833  ;;  %1675 = vmatpush1.bf16.msra.mxu1 %v2366_v30  ;;  %v991_v48 = vand.u32 4294901760, %v2402_v10  ;;  %v979_v1 = vand.u32 4294901760, %v2418_v13  ;;  %v985_v22 = vand.u32 4294901760, %v2420_v25  ;;  %vm2754_vm8 = vcmp.lt.s32.totalorder %v1876_v4, 112 }
 0x2ef   :  { %v837_v34 = vsel %vm2749_vm15, %v834_v50, %v836_v8  ;;  %v838_v27 = vsel %vm2750_vm6, %v836_v8, %v834_v50  ;;  %v2445_v62 = vsub.f32 %v832_v45, %v885_v58  ;;  %vm2755_vm13 = vmmov %vm2754_vm8  ;;  %v974_v15 = vsub.f32 %v2400_v29, %v973_v26 }
 0x2f0   :  { %v839_v63 = vsel %vm1885_vm1, %v838_v27, 0.0  ;;  %v840_v53 = vsel %vm1893_vm3, %v837_v34, 0.0  ;;  %v992_v8 = vsub.f32 %v2402_v10, %v991_v48  ;;  %vm2756_vm3 = vmand %vm1969_vm4, %vm1885_vm1  ;;  %v980_v4 = vsub.f32 %v2418_v13, %v979_v1 }
 0x2f1   :  { %v889_v43 = vand.u32 4294901760, %v840_v53  ;;  %v891_v0 = vand.u32 4294901760, %v839_v63  ;;  %vm2757_vm1 = vmand %vm1977_vm11, %vm1939_vm10  ;;  %v975_v46 = vand.u32 4294901760, %v974_v15  ;;  %v1022_v15 = vsub.f32 %v2398_v24, %v1021_v21 }
 0x2f2   :  { %v844_v17 = vpop.permute.xlu1 %843  ;;  %v842_v19 = vpop.permute.xlu0 %841 }
 0x2f3   :  { %v845_v40 = vsel %vm2752_vm0, %v842_v19, %v844_v17  ;;  %v846_v56 = vsel %vm2753_vm7, %v844_v17, %v842_v19  ;;  %v2412_v9 = vpack.c.bf16 %v889_v43, %v885_v58  ;;  %v2423_v32 = vpack.c.bf16 %v891_v0, %v887_v20 }
 0x2f4   :  { %v847_v41 = vsel %vm1933_vm9, %v845_v40, 0.0  ;;  %v848_v42 = vsel %vm1939_vm10, %v846_v56, 0.0  ;;  %v2434_v7 = vsub.f32 %v840_v53, %v889_v43  ;;  %v2450_v31 = vsub.f32 %v839_v63, %v891_v0 }
 0x2f5   :  { %v897_v16 = vand.u32 4294901760, %v848_v42  ;;  %v899_v18 = vand.u32 4294901760, %v847_v41  ;;  %1677 = vmatprep.subr.bf16.mxu1 %v2412_v9  ;;  %v2480_v53 = vsub.f32 %v831_v14, %v887_v20  ;;  %v986_v17 = vsub.f32 %v2420_v25, %v985_v22 }
 0x2f6   :  { %v852_v52 = vpop.permute.xlu1 %851  ;;  %v850_v28 = vpop.permute.xlu0 %849  ;;  %1679 = vmatpush1.bf16.msra.mxu1 %v2423_v32  ;;  %v1009_v45 = vand.u32 4294901760, %v2434_v7  ;;  %v997_v19 = vand.u32 4294901760, %v2445_v62  ;;  %v1015_v40 = vand.u32 4294901760, %v2450_v31 }
 0x2f7   :  { %v854_v54 = vsel %vm84_vm5, %v852_v52, %v850_v28  ;;  %v2430_v44 = vpack.c.bf16 %v897_v16, %v893_v39  ;;  %v2432_v5 = vpack.c.bf16 %v899_v18, %v895_v37  ;;  %v853_v47 = vsel %vm84_vm5, %v850_v28, %v852_v52  ;;  %vm2758_vm5 = vmand %vm1969_vm4, %vm1933_vm9 }
 0x2f8   :  { %v856_v57 = vsel %vm88_vm14, %v854_v54, 0.0  ;;  %v2473_v34 = vsub.f32 %v848_v42, %v897_v16  ;;  %v855_v27 = vsel %vm2756_vm3, %v853_v47, 0.0  ;;  %v2487_v56 = vsub.f32 %v847_v41, %v899_v18 }
 0x2f9   :  { %1681 = vmatprep.subr.bf16.mxu1 %v2430_v44  ;;  %v901_v43 = vand.u32 4294901760, %v856_v57  ;;  %v903_v42 = vand.u32 4294901760, %v855_v27  ;;  %v1010_v18 = vsub.f32 %v2434_v7, %v1009_v45  ;;  %v1003_v36 = vand.u32 4294901760, %v2480_v53 }
 0x2fa   :  { %v860_v3 = vpop.permute.xlu1 %859  ;;  %v858_v23 = vpop.permute.xlu0 %857  ;;  %1683 = vmatpush1.bf16.msra.mxu1 %v2432_v5  ;;  %v2709_v52 = vand.u32 4294901760, %v2473_v34  ;;  %v964_v54 = vand.u32 4294901760, %v2439_v55  ;;  %v2710_v55 = vand.u32 4294901760, %v2487_v56 }
 0x2fb   :  { %v861_v59 = vsel %vm2754_vm8, %v858_v23, %v860_v3  ;;  %v862_v61 = vsel %vm2755_vm13, %v860_v3, %v858_v23  ;;  %v2516_v47 = vsub.f32 %v856_v57, %v901_v43  ;;  %v987_v23 = vand.u32 4294901760, %v986_v17 }
 0x2fc   :  { %v863_v50 = vsel %vm1969_vm4, %v861_v59, 0.0  ;;  %v864_v39 = vsel %vm1977_vm11, %v862_v61, 0.0  ;;  %v998_v59 = vsub.f32 %v2445_v62, %v997_v19  ;;  %v993_v61 = vand.u32 4294901760, %v992_v8 }
 0x2fd   :  { %v905_v63 = vand.u32 4294901760, %v864_v39  ;;  %v907_v37 = vand.u32 4294901760, %v863_v50  ;;  %v1034_v8 = vsub.f32 %v2473_v34, %v2709_v52  ;;  %v1688_v17 = vpack.c.bf16 %v987_v23, %v975_v46 }
 0x2fe   :  { %v868_v58 = vpop.permute.xlu1 %867  ;;  %v866_v0 = vpop.permute.xlu0 %865 }
 0x2ff   :  { %v870_v11 = vsel %vm104_vm12, %v868_v58, %v866_v0  ;;  %v869_v14 = vsel %vm104_vm12, %v866_v0, %v868_v58  ;;  %v2498_v16 = vpack.c.bf16 %v905_v63, %v901_v43  ;;  %v2501_v28 = vsub.f32 %v864_v39, %v905_v63 }
 0x300   :  { %v872_v20 = vsel %vm2757_vm1, %v870_v11, 0.0  ;;  %v2513_v49 = vpack.c.bf16 %v907_v37, %v903_v42  ;;  %v871_v3 = vsel %vm2758_vm5, %v869_v14, 0.0  ;;  %v1016_v39 = vsub.f32 %v2450_v31, %v1015_v40 }
 0x301   :  { %v2503_v41 = vand.u32 4294901760, %v872_v20  ;;  %1685 = vmatprep.subr.bf16.mxu1 %v2498_v16  ;;  %v2530_v57 = vsub.f32 %v863_v50, %v907_v37  ;;  %v2711_v33 = vand.u32 4294901760, %v2501_v28  ;;  %v1011_v63 = vand.u32 4294901760, %v1010_v18 }
 0x302   :  { %1687 = vmatpush1.bf16.msra.mxu1 %v2513_v49  ;;  %v981_v43 = vand.u32 4294901760, %v980_v4  ;;  %v1004_v58 = vsub.f32 %v2480_v53, %v1003_v36  ;;  %v2541_v0 = vsub.f32 %v855_v27, %v903_v42  ;;  %v2543_v50 = vand.u32 4294901760, %v871_v3 }
 0x303   :  { %910 = vmatprep.subr.mxu1 %v2503_v41  ;;  %v2713_v37 = vand.u32 4294901760, %v2516_v47  ;;  %v999_v11 = vand.u32 4294901760, %v998_v59  ;;  %v1017_v14 = vand.u32 4294901760, %v1016_v39  ;;  %v1040_v18 = vsub.f32 %v2487_v56, %v2710_v55 }
 0x304   :  { %v2712_v4 = vand.u32 4294901760, %v2530_v57  ;;  %v1690_v27 = vpack.c.bf16 %v993_v61, %v981_v43  ;;  %v2555_v42 = vsub.f32 %v872_v20, %v2503_v41  ;;  %v1035_v59 = vand.u32 4294901760, %v1034_v8 }
 0x305   :  { %v1692_v23 = vpack.c.bf16 %v1011_v63, %v999_v11  ;;  %v1058_v39 = vsub.f32 %v2501_v28, %v2711_v33  ;;  %v1005_v46 = vand.u32 4294901760, %v1004_v58  ;;  %v1051_v52 = vand.u32 4294901760, %v2541_v0 }
 0x306   :  { %912 = vmatpush1.msra.mxu1 %v2543_v50  ;;  %v1028_v55 = vsub.f32 %v2415_v35, %v1027_v51  ;;  %v1023_v20 = vand.u32 4294901760, %v1022_v15  ;;  %v1041_v61 = vand.u32 4294901760, %v1040_v18  ;;  %v1064_v63 = vsub.f32 %v2530_v57, %v2712_v4 }
 0x307   :  { %1689 = vmatprep.subr.bf16.mxu1 %v1688_v17  ;;  %965 = vmatmul.mubr.f32.vlgmr.msra.gmra.mrb[0].mxu1 %v964_v54  ;;  %v1046_v54 = vsub.f32 %v2516_v47, %v2713_v37  ;;  %v2572_v8 = vsub.f32 %v871_v3, %v2543_v50  ;;  %v1694_v43 = vpack.c.bf16 %v1017_v14, %v1005_v46  ;;  %v1059_v17 = vand.u32 4294901760, %v1058_v39 }
 0x308   :  { %1691 = vmatpush1.bf16.msra.mxu1 %v1690_v27  ;;  %1125 = vmatprep.mubr.f32.mxu1 %v1810_v2  ;;  %v1696_v58 = vpack.c.bf16 %v1035_v59, %v1023_v20  ;;  %v1069_v11 = vand.u32 4294901760, %v2555_v42  ;;  %v1052_v15 = vsub.f32 %v2541_v0, %v1051_v52  ;;  %v1029_v27 = vand.u32 4294901760, %v1028_v55 }
 0x309   :  { %1693 = vmatprep.subr.bf16.mxu1 %v1692_v23  ;;  %v1047_v18 = vand.u32 4294901760, %v1046_v54  ;;  %v1065_v23 = vand.u32 4294901760, %v1064_v63  ;;  %v1075_v33 = vand.u32 4294901760, %v2572_v8  ;;  %v1704_v20 = vpack.c.bf16 %v2420_v25, %v2400_v29 }
 0x30a   :  { %v1698_v4 = vpack.c.bf16 %v1041_v61, %v1029_v27  ;;  %v1070_v3 = vsub.f32 %v2555_v42, %v1069_v11  ;;  %v1053_v14 = vand.u32 4294901760, %v1052_v15  ;;  %v1706_v54 = vpack.c.bf16 %v2402_v10, %v2418_v13 }
 0x30b   :  { %v1700_v37 = vpack.c.bf16 %v1059_v17, %v1047_v18  ;;  %v1076_v39 = vsub.f32 %v2572_v8, %v1075_v33  ;;  %v1712_v61 = vpack.c.bf16 %v2473_v34, %v2398_v24  ;;  %v1714_v63 = vpack.c.bf16 %v2487_v56, %v2415_v35 }
 0x30c   :  { %1695 = vmatpush1.bf16.msra.mxu1 %v1694_v43  ;;  %v1702_v59 = vpack.c.bf16 %v1065_v23, %v1053_v14  ;;  %v1071_v55 = vand.u32 4294901760, %v1070_v3  ;;  %v1716_v43 = vpack.c.bf16 %v2501_v28, %v2516_v47  ;;  %v1736_v17 = vpack.c.bf16 %v985_v22, %v973_v26 }
 0x30d   :  { %1697 = vmatprep.subr.bf16.mxu1 %v1696_v58  ;;  %v1077_v46 = vand.u32 4294901760, %v1076_v39  ;;  %v1718_v58 = vpack.c.bf16 %v2530_v57, %v2541_v0  ;;  %v1738_v15 = vpack.c.bf16 %v991_v48, %v979_v1  ;;  %v1740_v27 = vpack.c.bf16 %v1009_v45, %v997_v19  ;;  %v1801_v19 = vld [vmem:[%s2681_s0] sm:$0xff] }
 0x30e   :  { %v1742_v29 = vpack.c.bf16 %v1015_v40, %v1003_v36  ;;  %v2759_v10 = vand.u32 4294901760, %v2473_v34  ;;  %v2761_v25 = vand.u32 4294901760, %v2516_v47  ;;  %v2762_v26 = vand.u32 4294901760, %v2501_v28 }
 0x30f   :  { %v2763_v24 = vand.u32 4294901760, %v2530_v57 }
 0x310   :  { %1699 = vmatpush1.bf16.msra.mxu1 %v1698_v4  ;;  %v1710_v4 = vpack.c.bf16 %v2450_v31, %v2480_v53  ;;  %v1748_v48 = vpack.c.bf16 %v2762_v26, %v2761_v25 }
 0x311   :  { %1701 = vmatprep.subr.bf16.mxu1 %v1700_v37  ;;  %v1708_v37 = vpack.c.bf16 %v2434_v7, %v2445_v62  ;;  %v1750_v7 = vpack.c.bf16 %v2763_v24, %v1051_v52 }
 0x314   :  { %1703 = vmatpush1.bf16.msra.mxu1 %v1702_v59 }
 0x315   :  { %1072 = vmatprep.subr.mxu1 %v1071_v55 }
 0x318   :  { %1078 = vmatpush1.msra.mxu1 %v1077_v46 }
 0x319   :  { %1705 = vmatprep.subr.bf16.mxu1 %v1704_v20  ;;  %1127 = vmatmul.mubr.f32.vlgmr.msra.gmra.mrb[0].mxu1 %v2368_v60 }
 0x31a   :  { %1707 = vmatpush1.bf16.msra.mxu1 %v1706_v54  ;;  %1233 = vmatprep.mubr.f32.mxu1 %v1810_v2 }
 0x31b   :  { %1709 = vmatprep.subr.bf16.mxu1 %v1708_v37 }
 0x31e   :  { %1711 = vmatpush1.bf16.msra.mxu1 %v1710_v4 }
 0x31f   :  { %1713 = vmatprep.subr.bf16.mxu1 %v1712_v61 }
 0x322   :  { %1715 = vmatpush1.bf16.msra.mxu1 %v1714_v63 }
 0x323   :  { %1717 = vmatprep.subr.bf16.mxu1 %v1716_v43 }
 0x326   :  { %1719 = vmatpush1.bf16.msra.mxu1 %v1718_v58 }
 0x327   :  { %1183 = vmatprep.subr.mxu1 %v2555_v42 }
 0x32a   :  { %1186 = vmatpush1.msra.mxu1 %v2572_v8 }
 0x32b   :  { %1721 = vmatprep.subr.bf16.mxu1 %v2364_v12  ;;  %1236 = vmatmul.mubr.f32.vlgmr.msra.gmra.mrb[0].mxu1 %v2395_v38  ;;  %v1744_v38 = vpack.c.bf16 %v2759_v10, %v1021_v21 }
 0x32c   :  { %1723 = vmatpush1.bf16.msra.mxu1 %v2366_v30  ;;  %1324 = vmatprep.mubr.f32.mxu1 %v1810_v2 }
 0x32d   :  { %1725 = vmatprep.subr.bf16.mxu1 %v2412_v9 }
 0x330   :  { %1727 = vmatpush1.bf16.msra.mxu1 %v2423_v32 }
 0x331   :  { %1729 = vmatprep.subr.bf16.mxu1 %v2430_v44 }
 0x334   :  { %1731 = vmatpush1.bf16.msra.mxu1 %v2432_v5 }
 0x335   :  { %1733 = vmatprep.subr.bf16.mxu1 %v2498_v16 }
 0x338   :  { %1735 = vmatpush1.bf16.msra.mxu1 %v2513_v49 }
 0x339   :  { %1275 = vmatprep.subr.mxu1 %v2503_v41 }
 0x33c   :  { %1277 = vmatpush1.msra.mxu1 %v2543_v50 }
 0x33d   :  { %1737 = vmatprep.subr.bf16.mxu1 %v1736_v17  ;;  %1328 = vmatmul.mubr.f32.vlgmr.msra.gmra.mrb[0].mxu1 %v962_v6  ;;  %v2760_v6 = vand.u32 4294901760, %v2487_v56  ;;  %v1802_v56 = vld [vmem:[%s2681_s0 + $0x8] sm:$0xff] }
 0x33e   :  { %1739 = vmatpush1.bf16.msra.mxu1 %v1738_v15  ;;  %1452 = vmatprep.mubr.f32.mxu1 %v1810_v2 }
 0x33f   :  { %1741 = vmatprep.subr.bf16.mxu1 %v1740_v27  ;;  %v1746_v13 = vpack.c.bf16 %v2760_v6, %v1027_v51 }
 0x342   :  { %1743 = vmatpush1.bf16.msra.mxu1 %v1742_v29 }
 0x343   :  { %1745 = vmatprep.subr.bf16.mxu1 %v1744_v38 }
 0x346   :  { %1747 = vmatpush1.bf16.msra.mxu1 %v1746_v13 }
 0x347   :  { %1749 = vmatprep.subr.bf16.mxu1 %v1748_v48 }
 0x34a   :  { %1751 = vmatpush1.bf16.msra.mxu1 %v1750_v7 }
 0x34b   :  { %1401 = vmatprep.subr.mxu1 %v1069_v11 }
 0x34e   :  { %1405 = vmatpush1.msra.mxu1 %v1075_v33 }
 0x34f   :  { %1753 = vmatprep.subr.bf16.mxu1 %v2364_v12  ;;  %1454 = vmatmul.mubr.f32.vlgmr.msra.gmra.mrb[0].mxu1 %v2368_v60 }
 0x350   :  { %1755 = vmatpush1.bf16.msra.mxu1 %v2366_v30  ;;  %1542 = vmatprep.mubr.f32.mxu1 %v1810_v2 }
 0x351   :  { %1757 = vmatprep.subr.bf16.mxu1 %v2412_v9 }
 0x354   :  { %1759 = vmatpush1.bf16.msra.mxu1 %v2423_v32 }
 0x355   :  { %1761 = vmatprep.subr.bf16.mxu1 %v2430_v44 }
 0x358   :  { %1763 = vmatpush1.bf16.msra.mxu1 %v2432_v5 }
 0x359   :  { %1765 = vmatprep.subr.bf16.mxu1 %v2498_v16 }
 0x35c   :  { %1767 = vmatpush1.bf16.msra.mxu1 %v2513_v49 }
 0x35d   :  { %1493 = vmatprep.subr.mxu1 %v2503_v41 }
 0x360   :  { %1495 = vmatpush1.msra.mxu1 %v2543_v50 }
 0x361   :  { %1544 = vmatmul.mubr.f32.vlgmr.msra.gmra.mrb[0].mxu1 %v2368_v60 }
 0x434   :  { %v1545_v12 = vpop.f32.mrb[0].mxu1 }
 0x435   :  { %v1547_v2 = vpop.f32.mrb[1].mxu1  ;;  %v1554_v30 = vmul.f32 %v1545_v12, %v1545_v12 }
 0x436   :  { %v1555_v9 = vmul.f32 %v1547_v2, %v1547_v2  ;;  %v1550_v35 = vadd.f32 %v1547_v2, %v1545_v12 }
 0x438   :  { %1551 = vadd.xlane.f32.xlu0 %v1550_v35  ;;  %v1556_v32 = vadd.f32 %v1555_v9, %v1554_v30 }
 0x43a   :  { %1557 = vadd.xlane.f32.xlu1 %v1556_v32 }
 0x4c5   :  { %v1552_v44 = vpop.xlane.xlu0 %1551 }
 0x4c6   :  { %v1553_v5 = vmul.f32 0.00390625, %v1552_v44 }
 0x4c7   :  { %v1558_v21 = vpop.xlane.xlu1 %1557 }
 0x4c8   :  { %v1559_v51 = vmul.f32 0.00390625, %v1558_v21  ;;  %v1560_v1 = vmul.f32 %v1553_v5, %v1553_v5  ;;  %v1562_v31 = vsub.f32 %v1545_v12, %v1553_v5  ;;  %v1563_v45 = vsub.f32 %v1547_v2, %v1553_v5 }
 0x4ca   :  { %v1561_v22 = vsub.f32 %v1559_v51, %v1560_v1 }
 0x4cc   :  { %v1564_v62 = vadd.f32 1e-05, %v1561_v22 }
 0x4ce   :  { %1799 = vrsqrt.f32 %v1564_v62 }
 0x4d8   :  { %v1800_v34 = vpop.eup %1799 }
 0x4d9   :  { %v1566_v60 = vmul.f32 %v1800_v34, %v1562_v31  ;;  %v1567_v53 = vmul.f32 %v1800_v34, %v1563_v45 }
 0x4db   :  { %v1568_v40 = vadd.f32 %v1801_v19, %v1566_v60  ;;  %v1569_v16 = vadd.f32 %v1802_v56, %v1567_v53 }
 0x4dd   :  { %1570 = vst [vmem:[%s2684_s3] sm:$0xff] %v1568_v40  ;;  %1571 = vst [vmem:[%s2684_s3 + $0x8] sm:$0xff] %v1569_v16 }

</bundles_post_ra>
